<compile_context>
chip_gen: v7x
topology: tpu7x:2x2x1
jax: 0.10.0
libtpu: 0.0.40
codegen_flags: <defaults>
</compile_context>

<pallas_src>
import functools

import jax
import jax.numpy as jnp
from jax.experimental import pallas as pl
from jax.experimental.pallas import tpu as pltpu


def _round_up(x, m):
    return ((x + m - 1) // m) * m


def _make_critic_kernel(n_hidden):
    """Build a kernel for an MLP with `n_hidden` hidden layers (static)."""

    def kernel(obs_ref, act_ref, *refs):
        out_ref = refs[-1]                              # (1, TB)
        w1o_ref, w1a_ref, b1_ref = refs[0], refs[1], refs[2]

        # Layer 1: split matmul == concat(obs, act) @ W1  (concat fused away).
        obs = obs_ref[...].astype(jnp.bfloat16)
        act = act_ref[...].astype(jnp.bfloat16)
        h = jnp.dot(obs, w1o_ref[...], preferred_element_type=jnp.float32)
        h = h + jnp.dot(act, w1a_ref[...], preferred_element_type=jnp.float32)
        h = jnp.maximum(h + b1_ref[...], 0.0)           # f32 bias-add / ReLU

        # Hidden layers 2..n_hidden (Python loop unrolls at trace time).
        idx = 3
        for _ in range(n_hidden - 1):
            w_ref, b_ref = refs[idx], refs[idx + 1]
            idx += 2
            h = jnp.dot(h.astype(jnp.bfloat16), w_ref[...],
                        preferred_element_type=jnp.float32)
            h = jnp.maximum(h + b_ref[...], 0.0)

        # Output layer (out_features == 1): f32 NT matmul -> (1, TB).
        # Batch ends up on lanes => lane-dense, unmasked output store.
        wo_ref, bo_ref = refs[idx], refs[idx + 1]       # (1, H_last), (1, 1)
        q = jnp.einsum("oh,bh->ob", wo_ref[...], h,
                       preferred_element_type=jnp.float32) + bo_ref[...]
        out_ref[...] = q.astype(out_ref.dtype)

    return kernel


def _prepare_params(params, obs_dim):
    """Split W1 for the fused concat; weights bf16 for the MXU, biases f32 rows."""
    n_layers = len(params) // 2
    w1, b1 = params[0], params[1]
    prepared = [
        w1[:obs_dim].astype(jnp.bfloat16),              # (obs_dim, H1)
        w1[obs_dim:].astype(jnp.bfloat16),              # (act_dim, H1)
        b1.reshape(1, -1).astype(jnp.float32),          # (1, H1)
    ]
    for l in range(1, n_layers - 1):                    # hidden layers 2..L-1
        w, b = params[2 * l], params[2 * l + 1]
        prepared.append(w.astype(jnp.bfloat16))         # (H_{l}, H_{l+1})
        prepared.append(b.reshape(1, -1).astype(jnp.float32))
    w_out, b_out = params[-2], params[-1]
    prepared.append(w_out.reshape(1, -1).astype(jnp.float32))   # (1, H_last)
    prepared.append(b_out.reshape(1, 1).astype(jnp.float32))    # (1, 1)
    return prepared


@functools.partial(jax.jit, static_argnames=("block_b",))
def critic_forward(obs, act, params, *, block_b=512):
    """CriticBase.forward: returns q-values of shape (batch,)."""
    batch, obs_dim = obs.shape
    act_dim = act.shape[1]
    n_hidden = len(params) // 2 - 1                     # number of hidden layers
    prepared = _prepare_params(params, obs_dim)

    # Batch tiling: a single tile covers small batches; multi-tile runs use a
    # 128-aligned tile so input and (lane-major) output blocks stay aligned.
    if batch <= block_b:
        tb = _round_up(batch, 8)
    else:
        tb = _round_up(min(block_b, batch), 128)
    b_pad = _round_up(batch, tb)
    if b_pad != batch:
        obs = jnp.pad(obs, ((0, b_pad - batch), (0, 0)))
        act = jnp.pad(act, ((0, b_pad - batch), (0, 0)))
    grid = (b_pad // tb,)

    # Weights/biases: full block, constant index -> fetched once, VMEM-resident.
    def resident(a):
        return pl.BlockSpec(a.shape, lambda i: (0,) * a.ndim)

    sizes = [obs_dim + act_dim] + [params[2 * l].shape[1] for l in range(n_hidden)] + [1]
    flops = 2 * b_pad * sum(sizes[i] * sizes[i + 1] for i in range(len(sizes) - 1))
    bytes_accessed = (obs.size * obs.dtype.itemsize
                      + act.size * act.dtype.itemsize
                      + sum(p.size * p.dtype.itemsize for p in prepared)
                      + b_pad * 4)

    out = pl.pallas_call(
        _make_critic_kernel(n_hidden),
        out_shape=jax.ShapeDtypeStruct((1, b_pad), jnp.float32),
        grid=grid,
        in_specs=[
            pl.BlockSpec((tb, obs_dim), lambda i: (i, 0)),   # obs batch tile
            pl.BlockSpec((tb, act_dim), lambda i: (i, 0)),   # act batch tile
        ] + [resident(p) for p in prepared],
        out_specs=pl.BlockSpec((1, tb), lambda i: (0, i)),   # lane-dense q row
        compiler_params=pltpu.CompilerParams(
            dimension_semantics=("parallel",)),
        cost_estimate=pl.CostEstimate(flops=flops, transcendentals=0,
                                      bytes_accessed=bytes_accessed),
    )(obs, act, *prepared)

    # torch.squeeze(x, -1), dropping any batch padding (reshape is free).
    return out[0, :batch]


def init_params(key, obs_dim, act_dim, hidden_sizes):
    """PyTorch-style Linear init: U(-1/sqrt(fan_in), +1/sqrt(fan_in))."""
    sizes = (obs_dim + act_dim, *hidden_sizes, 1)
    params = []
    for i in range(len(sizes) - 1):
        fan_in, fan_out = sizes[i], sizes[i + 1]
        key, kw, kb = jax.random.split(key, 3)
        bound = 1.0 / jnp.sqrt(jnp.float32(fan_in))
        w = jax.random.uniform(kw, (fan_in, fan_out), jnp.float32, -bound, bound)
        b = jax.random.uniform(kb, (fan_out,), jnp.float32, -bound, bound)
        params.extend([w, b])
    return tuple(params)


def critic_forward_ref(obs, act, params, *, bf16=True):
    """Pure-JAX reference (bf16=True mirrors the kernel's mixed precision)."""
    h = jnp.concatenate((obs, act), axis=-1)
    n_layers = len(params) // 2
    for l in range(n_layers - 1):
        w, b = params[2 * l], params[2 * l + 1]
        if bf16:
            h, w = h.astype(jnp.bfloat16), w.astype(jnp.bfloat16)
        h = jnp.maximum(jnp.dot(h, w, preferred_element_type=jnp.float32) + b, 0.0)
    w, b = params[-2], params[-1]
    q = jnp.dot(h, w.astype(jnp.float32)) + b
    return jnp.squeeze(q, axis=-1)


if __name__ == "__main__":
    obs_dim, act_dim = 12, 4
    hidden_sizes = (32, 32)

    key = jax.random.PRNGKey(0)
    k_obs, k_act, k_param, k_obs2, k_act2 = jax.random.split(key, 5)
    params = init_params(k_param, obs_dim, act_dim, hidden_sizes)

    # Case 1: small batch -> single tile, no padding.
    batch = 8
    obs = jax.random.normal(k_obs, (batch, obs_dim), jnp.float32)
    act = jax.random.normal(k_act, (batch, act_dim), jnp.float32)
    q = jax.block_until_ready(critic_forward(obs, act, params))
    assert q.shape == (batch,), q.shape
    q_bf = critic_forward_ref(obs, act, params, bf16=True)
    assert jnp.allclose(q, q_bf, atol=1e-3, rtol=1e-3), (q, q_bf)
    q_f32 = critic_forward_ref(obs, act, params, bf16=False)
    assert jnp.allclose(q, q_f32, atol=5e-2, rtol=5e-2), (q, q_f32)

    # Case 2: batch-tiled grid + zero padding (300 -> 3 tiles of 128 rows).
    batch2 = 300
    obs2 = jax.random.normal(k_obs2, (batch2, obs_dim), jnp.float32)
    act2 = jax.random.normal(k_act2, (batch2, act_dim), jnp.float32)
    q2 = jax.block_until_ready(critic_forward(obs2, act2, params, block_b=128))
    assert q2.shape == (batch2,), q2.shape
    q2_bf = critic_forward_ref(obs2, act2, params, bf16=True)
    assert jnp.allclose(q2, q2_bf, atol=1e-3, rtol=1e-3), (q2, q2_bf)

    # Case 3: three hidden layers (exercises the generic-depth kernel path).
    params3 = init_params(k_param, obs_dim, act_dim, (32, 64, 32))
    q3 = jax.block_until_ready(critic_forward(obs, act, params3))
    assert q3.shape == (batch,), q3.shape
    q3_bf = critic_forward_ref(obs, act, params3, bf16=True)
    assert jnp.allclose(q3, q3_bf, atol=1e-3, rtol=1e-3), (q3, q3_bf)

    print("KERNEL_OK")
</pallas_src>

<mosaic_0001>
module attributes {stable_mosaic.version = 11 : i64} {
  func.func @kernel(%arg0: i32, %arg1: memref<8x12xf32, #tpu.memory_space<vmem>>, %arg2: memref<8x4xf32, #tpu.memory_space<vmem>>, %arg3: memref<12x32xbf16, #tpu.memory_space<vmem>>, %arg4: memref<4x32xbf16, #tpu.memory_space<vmem>>, %arg5: memref<1x32xf32, #tpu.memory_space<vmem>>, %arg6: memref<32x32xbf16, #tpu.memory_space<vmem>>, %arg7: memref<1x32xf32, #tpu.memory_space<vmem>>, %arg8: memref<1x32xf32, #tpu.memory_space<vmem>>, %arg9: memref<1x1xf32, #tpu.memory_space<vmem>>, %arg10: memref<1x8xf32, #tpu.memory_space<vmem>>) attributes {dimension_semantics = [#tpu.dimension_semantics<parallel>], iteration_bounds = array<i64: 1>, scalar_prefetch = 0 : i64, scratch_operands = 0 : i64, tpu.core_type = #tpu.core_type<tc>, window_params = [{transform_indices = @transform_0, window_bounds = array<i64: 8, 12>}, {transform_indices = @transform_1, window_bounds = array<i64: 8, 4>}, {pipeline_mode = #tpu.pipeline_mode<synchronous>, transform_indices = @transform_2, window_bounds = array<i64: 12, 32>}, {pipeline_mode = #tpu.pipeline_mode<synchronous>, transform_indices = @transform_3, window_bounds = array<i64: 4, 32>}, {pipeline_mode = #tpu.pipeline_mode<synchronous>, transform_indices = @transform_4, window_bounds = array<i64: 1, 32>}, {pipeline_mode = #tpu.pipeline_mode<synchronous>, transform_indices = @transform_5, window_bounds = array<i64: 32, 32>}, {pipeline_mode = #tpu.pipeline_mode<synchronous>, transform_indices = @transform_6, window_bounds = array<i64: 1, 32>}, {pipeline_mode = #tpu.pipeline_mode<synchronous>, transform_indices = @transform_7, window_bounds = array<i64: 1, 32>}, {pipeline_mode = #tpu.pipeline_mode<synchronous>, transform_indices = @transform_8, window_bounds = array<i64: 1, 1>}, {transform_indices = @transform_9, window_bounds = array<i64: 1, 8>}]} {
    %c0 = arith.constant 0 : index
    %c0_0 = arith.constant 0 : index
    %0 = vector.load %arg1[%c0, %c0_0] : memref<8x12xf32, #tpu.memory_space<vmem>>, vector<8x12xf32>
    %1 = arith.truncf %0 : vector<8x12xf32> to vector<8x12xbf16>
    %c0_1 = arith.constant 0 : index
    %c0_2 = arith.constant 0 : index
    %2 = vector.load %arg2[%c0_1, %c0_2] : memref<8x4xf32, #tpu.memory_space<vmem>>, vector<8x4xf32>
    %3 = arith.truncf %2 : vector<8x4xf32> to vector<8x4xbf16>
    %c0_3 = arith.constant 0 : index
    %c0_4 = arith.constant 0 : index
    %4 = vector.load %arg3[%c0_3, %c0_4] : memref<12x32xbf16, #tpu.memory_space<vmem>>, vector<12x32xbf16>
    %cst = arith.constant dense<0.000000e+00> : vector<8x32xf32>
    %5 = tpu.matmul %1, %4, %cst {dimension_numbers = #tpu.dot_dimension_numbers<[1], [0], [0], [1], [0, 0, 1, 1], [], []>} : vector<8x12xbf16>, vector<12x32xbf16>, vector<8x32xf32> -> vector<8x32xf32>
    %c0_5 = arith.constant 0 : index
    %c0_6 = arith.constant 0 : index
    %6 = vector.load %arg4[%c0_5, %c0_6] : memref<4x32xbf16, #tpu.memory_space<vmem>>, vector<4x32xbf16>
    %cst_7 = arith.constant dense<0.000000e+00> : vector<8x32xf32>
    %7 = tpu.matmul %3, %6, %cst_7 {dimension_numbers = #tpu.dot_dimension_numbers<[1], [0], [0], [1], [0, 0, 1, 1], [], []>} : vector<8x4xbf16>, vector<4x32xbf16>, vector<8x32xf32> -> vector<8x32xf32>
    %8 = arith.addf %5, %7 : vector<8x32xf32>
    %c0_8 = arith.constant 0 : index
    %c0_9 = arith.constant 0 : index
    %9 = vector.load %arg5[%c0_8, %c0_9] : memref<1x32xf32, #tpu.memory_space<vmem>>, vector<1x32xf32>
    %10 = vector.broadcast %9 : vector<1x32xf32> to vector<8x32xf32>
    %11 = arith.addf %8, %10 : vector<8x32xf32>
    %cst_10 = arith.constant 0.000000e+00 : f32
    %12 = vector.broadcast %cst_10 : f32 to vector<8x32xf32>
    %13 = arith.maximumf %11, %12 : vector<8x32xf32>
    %14 = arith.truncf %13 : vector<8x32xf32> to vector<8x32xbf16>
    %c0_11 = arith.constant 0 : index
    %c0_12 = arith.constant 0 : index
    %15 = vector.load %arg6[%c0_11, %c0_12] : memref<32x32xbf16, #tpu.memory_space<vmem>>, vector<32x32xbf16>
    %cst_13 = arith.constant dense<0.000000e+00> : vector<8x32xf32>
    %16 = tpu.matmul %14, %15, %cst_13 {dimension_numbers = #tpu.dot_dimension_numbers<[1], [0], [0], [1], [0, 0, 1, 1], [], []>} : vector<8x32xbf16>, vector<32x32xbf16>, vector<8x32xf32> -> vector<8x32xf32>
    %c0_14 = arith.constant 0 : index
    %c0_15 = arith.constant 0 : index
    %17 = vector.load %arg7[%c0_14, %c0_15] : memref<1x32xf32, #tpu.memory_space<vmem>>, vector<1x32xf32>
    %18 = vector.broadcast %17 : vector<1x32xf32> to vector<8x32xf32>
    %19 = arith.addf %16, %18 : vector<8x32xf32>
    %cst_16 = arith.constant 0.000000e+00 : f32
    %20 = vector.broadcast %cst_16 : f32 to vector<8x32xf32>
    %21 = arith.maximumf %19, %20 : vector<8x32xf32>
    %c0_17 = arith.constant 0 : index
    %c0_18 = arith.constant 0 : index
    %22 = vector.load %arg8[%c0_17, %c0_18] : memref<1x32xf32, #tpu.memory_space<vmem>>, vector<1x32xf32>
    "tpu.trace_start"() <{level = 10 : i32, message = "oh,bh->ob"}> : () -> ()
    %cst_19 = arith.constant dense<0.000000e+00> : vector<1x8xf32>
    %23 = tpu.matmul %22, %21, %cst_19 {dimension_numbers = #tpu.dot_dimension_numbers<[1], [1], [0], [0], [0, 0, 1, 0], [], []>} : vector<1x32xf32>, vector<8x32xf32>, vector<1x8xf32> -> vector<1x8xf32>
    "tpu.trace_stop"() : () -> ()
    %c0_20 = arith.constant 0 : index
    %c0_21 = arith.constant 0 : index
    %24 = vector.load %arg9[%c0_20, %c0_21] : memref<1x1xf32, #tpu.memory_space<vmem>>, vector<1x1xf32>
    %25 = vector.broadcast %24 : vector<1x1xf32> to vector<1x8xf32>
    %26 = arith.addf %23, %25 : vector<1x8xf32>
    %c0_22 = arith.constant 0 : index
    %c0_23 = arith.constant 0 : index
    %27 = vector.load %arg10[%c0_22, %c0_23] : memref<1x8xf32, #tpu.memory_space<vmem>>, vector<1x8xf32>
    tpu.vector_store %arg10[%c0_22, %c0_23], %26 {strides = array<i32>} : memref<1x8xf32, #tpu.memory_space<vmem>>, vector<1x8xf32>,
    return
  }
  func.func @transform_0(%arg0: i32) -> (i32, i32) {
    %c0_i32 = arith.constant 0 : i32
    %c0_i32_0 = arith.constant 0 : i32
    return %arg0, %c0_i32 : i32, i32
  }
  func.func @transform_1(%arg0: i32) -> (i32, i32) {
    %c0_i32 = arith.constant 0 : i32
    %c0_i32_0 = arith.constant 0 : i32
    return %arg0, %c0_i32 : i32, i32
  }
  func.func @transform_2(%arg0: i32) -> (i32, i32) {
    %c0_i32 = arith.constant 0 : i32
    %c0_i32_0 = arith.constant 0 : i32
    %c0_i32_1 = arith.constant 0 : i32
    return %c0_i32, %c0_i32_0 : i32, i32
  }
  func.func @transform_3(%arg0: i32) -> (i32, i32) {
    %c0_i32 = arith.constant 0 : i32
    %c0_i32_0 = arith.constant 0 : i32
    %c0_i32_1 = arith.constant 0 : i32
    return %c0_i32, %c0_i32_0 : i32, i32
  }
  func.func @transform_4(%arg0: i32) -> (i32, i32) {
    %c0_i32 = arith.constant 0 : i32
    %c0_i32_0 = arith.constant 0 : i32
    %c0_i32_1 = arith.constant 0 : i32
    return %c0_i32, %c0_i32_0 : i32, i32
  }
  func.func @transform_5(%arg0: i32) -> (i32, i32) {
    %c0_i32 = arith.constant 0 : i32
    %c0_i32_0 = arith.constant 0 : i32
    %c0_i32_1 = arith.constant 0 : i32
    return %c0_i32, %c0_i32_0 : i32, i32
  }
  func.func @transform_6(%arg0: i32) -> (i32, i32) {
    %c0_i32 = arith.constant 0 : i32
    %c0_i32_0 = arith.constant 0 : i32
    %c0_i32_1 = arith.constant 0 : i32
    return %c0_i32, %c0_i32_0 : i32, i32
  }
  func.func @transform_7(%arg0: i32) -> (i32, i32) {
    %c0_i32 = arith.constant 0 : i32
    %c0_i32_0 = arith.constant 0 : i32
    %c0_i32_1 = arith.constant 0 : i32
    return %c0_i32, %c0_i32_0 : i32, i32
  }
  func.func @transform_8(%arg0: i32) -> (i32, i32) {
    %c0_i32 = arith.constant 0 : i32
    %c0_i32_0 = arith.constant 0 : i32
    %c0_i32_1 = arith.constant 0 : i32
    return %c0_i32, %c0_i32_0 : i32, i32
  }
  func.func @transform_9(%arg0: i32) -> (i32, i32) {
    %c0_i32 = arith.constant 0 : i32
    %c0_i32_0 = arith.constant 0 : i32
    return %c0_i32, %arg0 : i32, i32
  }
}

</mosaic_0001>

<bundles_post_ra>
// kernel: critic_forward.1
= control target key start
LH: loop header
LB: loop body
LE: loop exit
PB: predicated region body
PF: predicated region fallthrough
CT: control target
= control target key end

     0   :  { %s504_s0 = inlined_call_operand.vmem [shape: f32[8,12], index: 0, kind: input, shape index: {}]   ;;  %s505_s1 = inlined_call_operand.vmem [shape: f32[8,4], index: 1, kind: input, shape index: {}]   ;;  %s506_s2 = inlined_call_operand.vmem [shape: bf16[12,32], index: 2, kind: input, shape index: {}]   ;;  %s507_s3 = inlined_call_operand.vmem [shape: bf16[4,32], index: 3, kind: input, shape index: {}]   ;;  %s508_s4 = inlined_call_operand.vmem [shape: f32[1,32], index: 4, kind: input, shape index: {}]   ;;  %s509_s5 = inlined_call_operand.vmem [shape: bf16[32,32], index: 5, kind: input, shape index: {}]   ;;  %s510_s6 = inlined_call_operand.vmem [shape: f32[1,32], index: 6, kind: input, shape index: {}]   ;;  %s511_s7 = inlined_call_operand.vmem [shape: f32[1,32], index: 7, kind: input, shape index: {}]   ;;  %s512_s8 = inlined_call_operand.<no memory space> [shape: f32[1,1], index: 8, kind: input, shape index: {}]   ;;  %s513_s9 = inlined_call_operand.hbm [shape: f32[1,8], index: 9, kind: output, shape index: {}]  }
   0x1   :  { %v14_v0 = vstv %s512_s8 }
   0x2   :  { %15 = vst [vmem:[#allocation2] sm:$0x1] %v14_v0 }
   0x3   :  { %v42_v1 = vld [vmem:[%s507_s3] sm:$0x3]  ;;  %vm47_vm0 = vcmask 1041408   ;;  %vm100_vm1 = vcmask 1045504   ;;  %v401_v2 = vmov 0.0   ;;  %vm402_vm2 = vmmov 0  }
   0x4   :  { %344 = vmatprep.subr.bf16.mxu0 %v401_v2  ;;  %v49_v3 = vsel %vm47_vm0, %v42_v1, 0  ;;  %350 = vmatprep.subr.bf16.mxu1 %v401_v2  ;;  %v38_v4 = vld [vmem:[%s505_s1] sm:$0xff]  ;;  %vm43_vm3 = vcmask 31744  }
   0x5   :  { %345 = vmatpush3.bf16.msra.mxu0 %v49_v3  ;;  %346 = vmatprep.mubr.msk.bf16.mxu0 %vm402_vm2, %v401_v2  ;;  %v374_v5 = vld [vmem:[%s506_s2] sm:$0x3f]   ;;  %v39_v6 = vpack.c.bf16 %v38_v4, %v38_v4 }
   0x6   :  { %v36_v7 = vld [vmem:[%s504_s0] sm:$0xff]  ;;  %352 = vmatprep.mubr.msk.bf16.mxu1 %vm402_vm2, %v401_v2  ;;  %356 = vmatprep.subr.bf16.mxu0 %v401_v2  ;;  %v102_v8 = vsel %vm100_vm1, %v374_v5, 0 }
   0x7   :  { %v37_v9 = vpack.c.bf16 %v36_v7, %v36_v7 }
   0x8   :  { %16 = vsyncpa [#allocation4], 0  ;;  %351 = vmatpush3.bf16.msra.mxu1 %v102_v8  ;;  %347 = vmatmul.mubr.msk.bf16.vlgmr.msra.gmra.mrb[0].mxu0 %vm43_vm3, %v39_v6  ;;  %vm96_vm4 = vcmask 97280   ;;  %v375_v10 = vld [vmem:[%s509_s5] sm:$0xff]   ;;  %v376_v11 = vld [vmem:[%s509_s5 + $0x8] sm:$0xff]   ;;  %vm177_vm5 = vcmask 261120   ;;  %v229_v35 = vlaneseq }
   0x9   :  { %360 = vmatprep.mubr.msk.bf16.mxu0 %vm402_vm2, %v401_v2  ;;  %364 = vmatprep.subr.mxu1 %v401_v2  ;;  %v328_v16 = vld [vmem:[%s508_s4] ss:$0 sm:$0xff]  ;;  %v403_v26 = vmov 0   ;;  %vm309_vm6 = vcmask 57344  }
   0xa   :  { %357 = vmatpush3.bf16.msra.mxu0 %v375_v10  ;;  %v223_v25 = vld [vmem:[#allocation2] sm:$0x1]  ;;  %373 = vset.pattern.permute.xlu0 %v403_v26  ;;  %v230_v36 = vshrl.u32 %v229_v35, 7 }
   0xb   :  { %353 = vmatmul.mubr.msk.bf16.vlgmr.msra.gmra.mrb[0].mxu1 %vm96_vm4, %v37_v9  ;;  %358 = vmatprep.subr.bf16.mxu0 %v401_v2  ;;  %v329_v27 = vld [vmem:[%s510_s6] ss:$0 sm:$0xff]  ;;  %s404_s6 = smov [#allocation3]  }
   0xc   :  { %366 = vmatprep.mubr.msk.f32.mxu1 %vm402_vm2, %v401_v2  ;;  %226 = vperm.xlu0 %373, %v223_v25   ;;  %v222_v34 = vld [vmem:[%s511_s7] sm:$0x1]  ;;  %v231_v37 = vsub.s32 0, %v230_v36  ;;  %s317_s22 = sshll.u32 %s404_s6, 4  ;;  %s318_s22 = int_to_ptr.vmem [resolvable:$true] %s317_s22 }
   0xd   :  { %s377_s23 = scalar_lea.vmem %s318_s22, 16  ;;  %s381_s24 = scalar_lea.vmem %s318_s22, 32 }
   0xe   :  { %359 = vmatpush3.bf16.msra.mxu0 %v376_v11  ;;  %p378_p0 = scmp.ne.s32.totalorder %s318_s22, %s377_s23  ;;  %p382_p1 = scmp.lt.s32.totalorder %s318_s22, %s318_s22 }
   0xf   :  { %p383_p2 = scmp.lt.s32.totalorder %s381_s24, %s377_s23 }
  0x11   :  { %p384_p3 = por %p383_p2, %p382_p1 }
  0x13   :  { %p385_p4 = pnand %p384_p3, %p378_p0 }
  0x8b   :  { %v227_v38 = vpop.permute.xlu0 %226 }
  0x8c   :  { %v232_v39 = vrot.slane %v227_v38, %v231_v37 }
  0xdb   :  { %v85_v12 = vpop.f32.mrb[0].mxu0 }
  0xdc   :  { %v348_v13 = vpop.f32.mrb[1].mxu0 }
  0xdd   :  { %v88_v14 = vpop.f32.mrb[2].mxu0 }
  0xde   :  { %v138_v15 = vpop.f32.mrb[0].mxu1  ;;  %v349_v17 = vpop.f32.mrb[3].mxu0 }
  0xdf   :  { %v139_v18 = vadd.f32 %v138_v15, %v85_v12  ;;  %v354_v19 = vpop.f32.mrb[1].mxu1 }
  0xe0   :  { %v141_v20 = vpop.f32.mrb[2].mxu1 }
  0xe1   :  { %v151_v21 = vadd.f32 %v328_v16, %v139_v18  ;;  %v355_v22 = vpop.f32.mrb[3].mxu1 }
  0xe3   :  { %v152_v23 = vmax.f32 %v151_v21, 0.0 }
  0xe5   :  { %v153_v24 = vpack.c.bf16 %v152_v23, %v152_v23 }
  0xe7   :  { %361 = vmatmul.mubr.msk.bf16.vlgmr.msra.gmra.mrb[4].mxu0 %vm177_vm5, %v153_v24 }
 0x1ba   :  { %v215_v28 = vpop.f32.mrb[4].mxu0 }
 0x1bb   :  { %v216_v29 = vadd.f32 %v329_v27, %v215_v28  ;;  %v362_v30 = vpop.f32.mrb[5].mxu0 }
 0x1bc   :  { %v218_v31 = vpop.f32.mrb[6].mxu0 }
 0x1bd   :  { %v221_v32 = vmax.f32 %v216_v29, 0.0  ;;  %v363_v33 = vpop.f32.mrb[7].mxu0 }
 0x1bf   :  { %365 = vmatpush3.xpose.msk.msra.mxu1 %vm177_vm5, %v221_v32 }
 0x1c2   :  { %367 = vmatmul.mubr.msk.f32.vlgmr.msra.gmra.mrb[4].mxu1 %vm177_vm5, %v222_v34 }
 0x295   :  { %v305_v40 = vpop.f32.mrb[4].mxu1 }
 0x296   :  { %v306_v41 = vadd.f32 %v305_v40, %v232_v39  ;;  %v368_v42 = vpop.f32.mrb[5].mxu1 }
 0x298   :  { %310 = vst.msk [vmem:[#allocation3] sm:$0x1] %vm309_vm6, %v306_v41 }
 0x299   :  { %388 = shalt.err (!%p385_p4)
}
 0x29a   :  { %s389_s26 = scalar_lea.hbm %s513_s9, 16 }
 0x29b   :  { %p390_p5 = scmp.ne.s32.totalorder %s513_s9, %s389_s26  ;;  %p393_p6 = scmp.lt.u32.totalorder %s389_s26, %s513_s9 }
 0x29d   :  { %p395_p7 = pnand %p393_p6, %p390_p5 }
 0x29f   :  { %398 = shalt.err (!%p395_p7)
}
 0x2a0   :  { %320 = dma.vmem_to_hbm [thread:$0]  %s318_s22, 16, %s513_s9, [#allocation4]  }
 0x2a1   :  { %399 = dma.done.wait [#allocation4], 16  }
 0x2a2   :  { %400 = vsyncadd [#allocation4], 4294967280 }
 0x2a3   :  { %324 = vsyncpa [#allocation4], 1 }

</bundles_post_ra>
